<compile_context>
chip_gen: v7x
topology: tpu7x:2x2x1
jax: 0.10.0
libtpu: 0.0.40
codegen_flags: <defaults>
</compile_context>

<pallas_src>
import jax
import jax.numpy as jnp
import numpy as np
from jax.experimental import pallas as pl
from jax.experimental.pallas import tpu as pltpu


def encoder_kernel(x_ref, m1_ref, b1_ref, g1_ref, be1_ref,
                   m2_ref, b2_ref, g2_ref, be2_ref,
                   out_ref, xs_ref, zs_ref, s2_ref):
    N, H, W = x_ref.shape
    Hh, Wh, Hq = H // 2, W // 2, H // 4
    L1 = m1_ref.shape[2]            # W  * C1  (packed stage-1 lane width, 128)
    L2 = m2_ref.shape[1]            # Wh * C2  (packed stage-2 lane width, 128)
    C1 = L1 // W
    C2 = L2 // Wh
    eps = 1e-5
    f32 = jnp.float32

    def bn_relu(y, n_groups, group, gamma, beta, count):
        # Train-mode batch-norm (biased var) in a single pass over y.
        # y is packed (rows, n_groups*group); channel = lane % group.
        st = jnp.concatenate([jnp.sum(y, axis=0, keepdims=True),
                              jnp.sum(y * y, axis=0, keepdims=True)], axis=0)
        sh, g = group, n_groups
        while g > 1:                 # all-reduce across W groups via lane rolls
            st = st + pltpu.roll(st, sh, axis=1)
            sh, g = sh * 2, g // 2
        inv_n = 1.0 / count          # compile-time constant
        mean = st[0:1, :] * inv_n
        var = st[1:2, :] * inv_n - mean * mean
        scale = jax.lax.rsqrt(var + eps) * gamma          # EUP rsqrt
        shift = beta - mean * scale
        return jnp.maximum(y * scale + shift, 0.0)

    # ---- stage 1: in-kernel H zero-halo (W padding lives in the band matrices)
    xs_ref[:, 0:1, :] = jnp.zeros((N, 1, W), f32)
    xs_ref[:, H + 1:H + 2, :] = jnp.zeros((N, 1, W), f32)
    xs_ref[:, 1:H + 1, :] = x_ref[...]

    # conv1: 3 banded GEMMs (one per dy tap), lane-dense (N*H, W*C1) output.
    acc = jnp.zeros((N * H, L1), f32)
    for dy in range(3):
        rows = xs_ref[:, dy:dy + H, :].reshape(N * H, W).astype(jnp.bfloat16)
        acc = acc + jnp.dot(rows, m1_ref[dy], preferred_element_type=f32)
    y1 = bn_relu(acc + b1_ref[...], W, C1, g1_ref[...], be1_ref[...],
                 float(N * H * W))

    # pool1, W direction only: pair lane-group w with w+1 (valid at even w;
    # the odd groups are dead and are zeroed out inside conv2's band matrix).
    zw1 = jnp.maximum(y1, pltpu.roll(y1, L1 - C1, axis=1))

    # Stash with a 2-row zero halo top & bottom.  This one scratch provides both
    # conv2's H zero-padding and the stride-2 row selection that finishes
    # pool1's H direction.  Only the 4 halo rows are zeroed.
    zs_ref[:, 0:2, :] = jnp.zeros((N, 2, L1), f32)
    zs_ref[:, H + 2:H + 4, :] = jnp.zeros((N, 2, L1), f32)
    zs_ref[:, 2:H + 2, :] = zw1.reshape(N, H, L1)

    # ---- stage 2: conv2 as ONE GEMM, K = 3 * W * C1 (= 384) ----
    taps = []
    for dy in range(3):
        a = zs_ref[:, pl.ds(2 * dy, Hh, 2), :]        # rows 2*(hh+dy-1)   (+ halo)
        b = zs_ref[:, pl.ds(2 * dy + 1, Hh, 2), :]    # rows 2*(hh+dy-1)+1 (+ halo)
        taps.append(jnp.maximum(a, b).reshape(N * Hh, L1).astype(jnp.bfloat16))
    patch = jnp.concatenate(taps, axis=1)             # (N*Hh, 3*L1), lane-aligned
    y2 = jnp.dot(patch, m2_ref[...], preferred_element_type=f32) + b2_ref[...]
    y2 = bn_relu(y2, Wh, C2, g2_ref[...], be2_ref[...], float(N * Hh * Wh))

    # ---- pool2: W direction via lane roll, H direction via stride-2 rows ----
    s2_ref[...] = jnp.maximum(y2, pltpu.roll(y2, L2 - C2, axis=1))
    out_ref[...] = jnp.maximum(s2_ref[pl.ds(0, N * Hq, 2), :],
                               s2_ref[pl.ds(1, N * Hq, 2), :])


def _band_matrix_1(w1, W, C1):
    # M1[dy][r, w*C1 + c] = w1[dy, dx, 0, c]  with r = w + dx - 1 and 0 <= r < W
    # (out-of-range taps dropped == zero padding in W).
    dx = jnp.arange(3)[:, None, None]
    r = jnp.arange(W)[None, :, None]
    w = jnp.arange(W)[None, None, :]
    sel = (r == w + dx - 1).astype(jnp.float32)                       # (3, W, W)
    m = jnp.einsum('drw,edc->erwc', sel, w1[:, :, 0, :],
                   precision=jax.lax.Precision.HIGHEST)               # (3, W, W, C1)
    return m.reshape(3, W, W * C1).astype(jnp.bfloat16)


def _band_matrix_2(w2, Wh, C1, C2):
    # M2[(dy, f, ci), (wo, co)] = w2[dy, dx, ci, co]  with f = 2*(wo + dx - 1).
    # f indexes the *uncompacted* pool1 lane groups; odd-f rows stay zero, which
    # folds the pool1 W-compaction (and W zero padding) into the GEMM.
    dx = jnp.arange(3)[:, None, None]
    f = jnp.arange(2 * Wh)[None, :, None]
    wo = jnp.arange(Wh)[None, None, :]
    sel = (f == 2 * (wo + dx - 1)).astype(jnp.float32)                # (3, 2*Wh, Wh)
    m = jnp.einsum('dfw,edio->efiwo', sel, w2,
                   precision=jax.lax.Precision.HIGHEST)               # (3, 2Wh, C1, Wh, C2)
    return m.reshape(3 * 2 * Wh * C1, Wh * C2).astype(jnp.bfloat16)


@jax.jit
def encoder_forward(x_nchw, w1, b1, g1, be1, w2, b2, g2, be2):
    N, Cin, H, W = x_nchw.shape
    assert Cin == 1 and H % 4 == 0 and W % 4 == 0
    assert (W & (W - 1)) == 0                      # log-step group reduce needs pow2
    C1, C2 = w1.shape[-1], w2.shape[-1]
    Hh, Wh, Hq, Wq = H // 2, W // 2, H // 4, W // 4

    x = x_nchw.reshape(N, H, W).astype(jnp.float32)   # Cin==1: NCHW -> (N,H,W) is free
    m1 = _band_matrix_1(w1.astype(jnp.float32), W, C1)
    m2 = _band_matrix_2(w2.astype(jnp.float32), Wh, C1, C2)
    tile = lambda v, reps: jnp.tile(v.astype(jnp.float32), reps).reshape(1, -1)

    out_flat = pl.pallas_call(
        encoder_kernel,
        out_shape=jax.ShapeDtypeStruct((N * Hq, Wh * C2), jnp.float32),
        in_specs=[pl.BlockSpec(memory_space=pltpu.MemorySpace.VMEM)] * 9,
        out_specs=pl.BlockSpec(memory_space=pltpu.MemorySpace.VMEM),
        scratch_shapes=[
            pltpu.VMEM((N, H + 2, W), jnp.float32),        # conv1 input + H halo
            pltpu.VMEM((N, H + 4, W * C1), jnp.float32),   # pool1 stash + conv2 H halo
            pltpu.VMEM((N * Hh, Wh * C2), jnp.float32),    # pool2 W-maxed rows
        ],
    )(x, m1, tile(b1, W), tile(g1, W), tile(be1, W),
      m2, tile(b2, Wh), tile(g2, Wh), tile(be2, Wh))

    # Unpack: row = n*Hq + hq, lane = ww*C2 + c with the pooled value at even ww.
    out = out_flat.reshape(N, Hq, Wq, 2, C2)[:, :, :, 0, :]
    return jnp.transpose(out, (0, 3, 1, 2))               # NHWC -> NCHW


def encoder_ref(x_nchw, w1, b1, g1, be1, w2, b2, g2, be2):
    """Pure-JAX reference matching the PyTorch forward (train-mode BN)."""
    eps = 1e-5

    def conv(x, w_hwio, b):
        w_oihw = jnp.transpose(w_hwio, (3, 2, 0, 1))
        y = jax.lax.conv_general_dilated(
            x, w_oihw, window_strides=(1, 1), padding=((1, 1), (1, 1)),
            dimension_numbers=('NCHW', 'OIHW', 'NCHW'),
            precision=jax.lax.Precision.HIGHEST)
        return y + b.reshape(1, -1, 1, 1)

    def bn_relu(x, g, be):
        mean = jnp.mean(x, axis=(0, 2, 3), keepdims=True)
        var = jnp.mean((x - mean) ** 2, axis=(0, 2, 3), keepdims=True)
        y = (x - mean) / jnp.sqrt(var + eps)
        y = y * g.reshape(1, -1, 1, 1) + be.reshape(1, -1, 1, 1)
        return jnp.maximum(y, 0.0)

    def pool(x):
        n, c, h, w = x.shape
        return x.reshape(n, c, h // 2, 2, w // 2, 2).max(axis=(3, 5))

    x = pool(bn_relu(conv(x_nchw, w1, b1), g1, be1))
    x = pool(bn_relu(conv(x, w2, b2), g2, be2))
    return x


if __name__ == "__main__":
    key = jax.random.PRNGKey(0)
    ks = jax.random.split(key, 10)
    N, H, W = 2, 16, 16
    x = jax.random.normal(ks[0], (N, 1, H, W), jnp.float32)
    # weights stored as (kH, kW, Cin, Cout)
    w1 = 0.3 * jax.random.normal(ks[1], (3, 3, 1, 8), jnp.float32)
    b1 = 0.1 * jax.random.normal(ks[2], (8,), jnp.float32)
    g1 = 1.0 + 0.1 * jax.random.normal(ks[3], (8,), jnp.float32)
    be1 = 0.1 * jax.random.normal(ks[4], (8,), jnp.float32)
    w2 = 0.2 * jax.random.normal(ks[5], (3, 3, 8, 16), jnp.float32)
    b2 = 0.1 * jax.random.normal(ks[6], (16,), jnp.float32)
    g2 = 1.0 + 0.1 * jax.random.normal(ks[7], (16,), jnp.float32)
    be2 = 0.1 * jax.random.normal(ks[8], (16,), jnp.float32)

    out = jax.block_until_ready(encoder_forward(x, w1, b1, g1, be1, w2, b2, g2, be2))
    ref = jax.block_until_ready(encoder_ref(x, w1, b1, g1, be1, w2, b2, g2, be2))

    assert out.shape == (N, 16, H // 4, W // 4), out.shape
    # Tolerance sized for intentional bf16 MXU operands (f32 accumulate) across
    # two cascaded conv+BN stages, compared against an f32/HIGHEST reference.
    np.testing.assert_allclose(np.asarray(out), np.asarray(ref), rtol=3e-2, atol=3e-2)
    print("KERNEL_OK")
</pallas_src>

<mosaic_0001>
module attributes {stable_mosaic.version = 11 : i64} {
  func.func @encoder_kernel(%arg0: memref<2x16x16xf32, #tpu.memory_space<vmem>>, %arg1: memref<3x16x128xbf16, #tpu.memory_space<vmem>>, %arg2: memref<1x128xf32, #tpu.memory_space<vmem>>, %arg3: memref<1x128xf32, #tpu.memory_space<vmem>>, %arg4: memref<1x128xf32, #tpu.memory_space<vmem>>, %arg5: memref<384x128xbf16, #tpu.memory_space<vmem>>, %arg6: memref<1x128xf32, #tpu.memory_space<vmem>>, %arg7: memref<1x128xf32, #tpu.memory_space<vmem>>, %arg8: memref<1x128xf32, #tpu.memory_space<vmem>>, %arg9: memref<8x128xf32, #tpu.memory_space<vmem>>, %arg10: memref<2x18x16xf32, #tpu.memory_space<vmem>>, %arg11: memref<2x20x128xf32, #tpu.memory_space<vmem>>, %arg12: memref<16x128xf32, #tpu.memory_space<vmem>>) attributes {dimension_semantics = [], scalar_prefetch = 0 : i64, scratch_operands = 3 : i64, tpu.core_type = #tpu.core_type<tc>} {
    %cst = arith.constant 0.000000e+00 : f32
    %0 = vector.broadcast %cst : f32 to vector<2x1x16xf32>
    %c0 = arith.constant 0 : index
    %c0_0 = arith.constant 0 : index
    %c0_1 = arith.constant 0 : index
    %1 = vector.load %arg10[%c0, %c0_0, %c0_1] : memref<2x18x16xf32, #tpu.memory_space<vmem>>, vector<2x1x16xf32>
    tpu.vector_store %arg10[%c0, %c0_0, %c0_1], %0 {strides = array<i32>} : memref<2x18x16xf32, #tpu.memory_space<vmem>>, vector<2x1x16xf32>,
    %cst_2 = arith.constant 0.000000e+00 : f32
    %2 = vector.broadcast %cst_2 : f32 to vector<2x1x16xf32>
    %c0_3 = arith.constant 0 : index
    %c17 = arith.constant 17 : index
    %c0_4 = arith.constant 0 : index
    %3 = vector.load %arg10[%c0_3, %c17, %c0_4] : memref<2x18x16xf32, #tpu.memory_space<vmem>>, vector<2x1x16xf32>
    tpu.vector_store %arg10[%c0_3, %c17, %c0_4], %2 {strides = array<i32>} : memref<2x18x16xf32, #tpu.memory_space<vmem>>, vector<2x1x16xf32>,
    %c0_5 = arith.constant 0 : index
    %c0_6 = arith.constant 0 : index
    %c0_7 = arith.constant 0 : index
    %4 = vector.load %arg0[%c0_5, %c0_6, %c0_7] : memref<2x16x16xf32, #tpu.memory_space<vmem>>, vector<2x16x16xf32>
    %c0_8 = arith.constant 0 : index
    %c1 = arith.constant 1 : index
    %c0_9 = arith.constant 0 : index
    %5 = vector.load %arg10[%c0_8, %c1, %c0_9] : memref<2x18x16xf32, #tpu.memory_space<vmem>>, vector<2x16x16xf32>
    tpu.vector_store %arg10[%c0_8, %c1, %c0_9], %4 {strides = array<i32>} : memref<2x18x16xf32, #tpu.memory_space<vmem>>, vector<2x16x16xf32>,
    %cst_10 = arith.constant 0.000000e+00 : f32
    %6 = vector.broadcast %cst_10 : f32 to vector<32x128xf32>
    %c0_11 = arith.constant 0 : index
    %c0_12 = arith.constant 0 : index
    %c0_13 = arith.constant 0 : index
    %7 = vector.load %arg10[%c0_11, %c0_12, %c0_13] : memref<2x18x16xf32, #tpu.memory_space<vmem>>, vector<2x16x16xf32>
    %8 = vector.shape_cast %7 : vector<2x16x16xf32> to vector<32x16xf32>
    %9 = arith.truncf %8 : vector<32x16xf32> to vector<32x16xbf16>
    %c0_14 = arith.constant 0 : index
    %c0_15 = arith.constant 0 : index
    %c0_16 = arith.constant 0 : index
    %10 = vector.load %arg1[%c0_14, %c0_15, %c0_16] : memref<3x16x128xbf16, #tpu.memory_space<vmem>>, vector<1x16x128xbf16>
    %11 = vector.shape_cast %10 : vector<1x16x128xbf16> to vector<16x128xbf16>
    %cst_17 = arith.constant dense<0.000000e+00> : vector<32x128xf32>
    %12 = tpu.matmul %9, %11, %cst_17 {dimension_numbers = #tpu.dot_dimension_numbers<[1], [0], [0], [1], [0, 0, 1, 1], [], []>} : vector<32x16xbf16>, vector<16x128xbf16>, vector<32x128xf32> -> vector<32x128xf32>
    %13 = arith.addf %6, %12 : vector<32x128xf32>
    %c0_18 = arith.constant 0 : index
    %c1_19 = arith.constant 1 : index
    %c0_20 = arith.constant 0 : index
    %14 = vector.load %arg10[%c0_18, %c1_19, %c0_20] : memref<2x18x16xf32, #tpu.memory_space<vmem>>, vector<2x16x16xf32>
    %15 = vector.shape_cast %14 : vector<2x16x16xf32> to vector<32x16xf32>
    %16 = arith.truncf %15 : vector<32x16xf32> to vector<32x16xbf16>
    %c1_21 = arith.constant 1 : index
    %c0_22 = arith.constant 0 : index
    %c0_23 = arith.constant 0 : index
    %17 = vector.load %arg1[%c1_21, %c0_22, %c0_23] : memref<3x16x128xbf16, #tpu.memory_space<vmem>>, vector<1x16x128xbf16>
    %18 = vector.shape_cast %17 : vector<1x16x128xbf16> to vector<16x128xbf16>
    %cst_24 = arith.constant dense<0.000000e+00> : vector<32x128xf32>
    %19 = tpu.matmul %16, %18, %cst_24 {dimension_numbers = #tpu.dot_dimension_numbers<[1], [0], [0], [1], [0, 0, 1, 1], [], []>} : vector<32x16xbf16>, vector<16x128xbf16>, vector<32x128xf32> -> vector<32x128xf32>
    %20 = arith.addf %13, %19 : vector<32x128xf32>
    %c0_25 = arith.constant 0 : index
    %c2 = arith.constant 2 : index
    %c0_26 = arith.constant 0 : index
    %21 = vector.load %arg10[%c0_25, %c2, %c0_26] : memref<2x18x16xf32, #tpu.memory_space<vmem>>, vector<2x16x16xf32>
    %22 = vector.shape_cast %21 : vector<2x16x16xf32> to vector<32x16xf32>
    %23 = arith.truncf %22 : vector<32x16xf32> to vector<32x16xbf16>
    %c2_27 = arith.constant 2 : index
    %c0_28 = arith.constant 0 : index
    %c0_29 = arith.constant 0 : index
    %24 = vector.load %arg1[%c2_27, %c0_28, %c0_29] : memref<3x16x128xbf16, #tpu.memory_space<vmem>>, vector<1x16x128xbf16>
    %25 = vector.shape_cast %24 : vector<1x16x128xbf16> to vector<16x128xbf16>
    %cst_30 = arith.constant dense<0.000000e+00> : vector<32x128xf32>
    %26 = tpu.matmul %23, %25, %cst_30 {dimension_numbers = #tpu.dot_dimension_numbers<[1], [0], [0], [1], [0, 0, 1, 1], [], []>} : vector<32x16xbf16>, vector<16x128xbf16>, vector<32x128xf32> -> vector<32x128xf32>
    %27 = arith.addf %20, %26 : vector<32x128xf32>
    %c0_31 = arith.constant 0 : index
    %c0_32 = arith.constant 0 : index
    %28 = vector.load %arg2[%c0_31, %c0_32] : memref<1x128xf32, #tpu.memory_space<vmem>>, vector<1x128xf32>
    %29 = vector.broadcast %28 : vector<1x128xf32> to vector<32x128xf32>
    %30 = arith.addf %27, %29 : vector<32x128xf32>
    %c0_33 = arith.constant 0 : index
    %c0_34 = arith.constant 0 : index
    %31 = vector.load %arg3[%c0_33, %c0_34] : memref<1x128xf32, #tpu.memory_space<vmem>>, vector<1x128xf32>
    %c0_35 = arith.constant 0 : index
    %c0_36 = arith.constant 0 : index
    %32 = vector.load %arg4[%c0_35, %c0_36] : memref<1x128xf32, #tpu.memory_space<vmem>>, vector<1x128xf32>
    %cst_37 = arith.constant dense<0.000000e+00> : vector<128xf32>
    %33 = vector.multi_reduction <add>, %30, %cst_37 [0] : vector<32x128xf32> to vector<128xf32>
    %34 = vector.shape_cast %33 : vector<128xf32> to vector<1x128xf32>
    %35 = arith.mulf %30, %30 : vector<32x128xf32>
    %cst_38 = arith.constant dense<0.000000e+00> : vector<128xf32>
    %36 = vector.multi_reduction <add>, %35, %cst_38 [0] : vector<32x128xf32> to vector<128xf32>
    %37 = vector.shape_cast %36 : vector<128xf32> to vector<1x128xf32>
    %38 = tpu.concatenate %34, %37 in 0 : vector<1x128xf32>, vector<1x128xf32> -> vector<2x128xf32>
    %c8_i32 = arith.constant 8 : i32
    %39 = tpu.dynamic_rotate %38 by %c8_i32 dim 1 : vector<2x128xf32>, i32 -> vector<2x128xf32>
    %40 = arith.addf %38, %39 : vector<2x128xf32>
    %c16_i32 = arith.constant 16 : i32
    %41 = tpu.dynamic_rotate %40 by %c16_i32 dim 1 : vector<2x128xf32>, i32 -> vector<2x128xf32>
    %42 = arith.addf %40, %41 : vector<2x128xf32>
    %c32_i32 = arith.constant 32 : i32
    %43 = tpu.dynamic_rotate %42 by %c32_i32 dim 1 : vector<2x128xf32>, i32 -> vector<2x128xf32>
    %44 = arith.addf %42, %43 : vector<2x128xf32>
    %c64_i32 = arith.constant 64 : i32
    %45 = tpu.dynamic_rotate %44 by %c64_i32 dim 1 : vector<2x128xf32>, i32 -> vector<2x128xf32>
    %46 = arith.addf %44, %45 : vector<2x128xf32>
    %47 = vector.extract_strided_slice %46 {offsets = [0, 0], sizes = [1, 128], strides = [1, 1]} : vector<2x128xf32> to vector<1x128xf32>
    %cst_39 = arith.constant 0.001953125 : f32
    %48 = vector.broadcast %cst_39 : f32 to vector<1x128xf32>
    %49 = arith.mulf %47, %48 : vector<1x128xf32>
    %50 = vector.extract_strided_slice %46 {offsets = [1, 0], sizes = [1, 128], strides = [1, 1]} : vector<2x128xf32> to vector<1x128xf32>
    %cst_40 = arith.constant 0.001953125 : f32
    %51 = vector.broadcast %cst_40 : f32 to vector<1x128xf32>
    %52 = arith.mulf %50, %51 : vector<1x128xf32>
    %53 = arith.mulf %49, %49 : vector<1x128xf32>
    %54 = arith.subf %52, %53 : vector<1x128xf32>
    %cst_41 = arith.constant 9.99999974E-6 : f32
    %55 = vector.broadcast %cst_41 : f32 to vector<1x128xf32>
    %56 = arith.addf %54, %55 : vector<1x128xf32>
    %57 = math.rsqrt %56 : vector<1x128xf32>
    %58 = arith.mulf %57, %31 : vector<1x128xf32>
    %59 = arith.mulf %49, %58 : vector<1x128xf32>
    %60 = arith.subf %32, %59 : vector<1x128xf32>
    %61 = vector.broadcast %58 : vector<1x128xf32> to vector<32x128xf32>
    %62 = arith.mulf %30, %61 : vector<32x128xf32>
    %63 = vector.broadcast %60 : vector<1x128xf32> to vector<32x128xf32>
    %64 = arith.addf %62, %63 : vector<32x128xf32>
    %cst_42 = arith.constant 0.000000e+00 : f32
    %65 = vector.broadcast %cst_42 : f32 to vector<32x128xf32>
    %66 = arith.maximumf %64, %65 : vector<32x128xf32>
    %c120_i32 = arith.constant 120 : i32
    %67 = tpu.dynamic_rotate %66 by %c120_i32 dim 1 : vector<32x128xf32>, i32 -> vector<32x128xf32>
    %68 = arith.maximumf %66, %67 : vector<32x128xf32>
    %cst_43 = arith.constant 0.000000e+00 : f32
    %69 = vector.broadcast %cst_43 : f32 to vector<2x2x128xf32>
    %c0_44 = arith.constant 0 : index
    %c0_45 = arith.constant 0 : index
    %c0_46 = arith.constant 0 : index
    %70 = vector.load %arg11[%c0_44, %c0_45, %c0_46] : memref<2x20x128xf32, #tpu.memory_space<vmem>>, vector<2x2x128xf32>
    tpu.vector_store %arg11[%c0_44, %c0_45, %c0_46], %69 {strides = array<i32>} : memref<2x20x128xf32, #tpu.memory_space<vmem>>, vector<2x2x128xf32>,
    %cst_47 = arith.constant 0.000000e+00 : f32
    %71 = vector.broadcast %cst_47 : f32 to vector<2x2x128xf32>
    %c0_48 = arith.constant 0 : index
    %c18 = arith.constant 18 : index
    %c0_49 = arith.constant 0 : index
    %72 = vector.load %arg11[%c0_48, %c18, %c0_49] : memref<2x20x128xf32, #tpu.memory_space<vmem>>, vector<2x2x128xf32>
    tpu.vector_store %arg11[%c0_48, %c18, %c0_49], %71 {strides = array<i32>} : memref<2x20x128xf32, #tpu.memory_space<vmem>>, vector<2x2x128xf32>,
    %73 = vector.shape_cast %68 : vector<32x128xf32> to vector<2x16x128xf32>
    %c0_50 = arith.constant 0 : index
    %c2_51 = arith.constant 2 : index
    %c0_52 = arith.constant 0 : index
    %74 = vector.load %arg11[%c0_50, %c2_51, %c0_52] : memref<2x20x128xf32, #tpu.memory_space<vmem>>, vector<2x16x128xf32>
    tpu.vector_store %arg11[%c0_50, %c2_51, %c0_52], %73 {strides = array<i32>} : memref<2x20x128xf32, #tpu.memory_space<vmem>>, vector<2x16x128xf32>,
    %c0_53 = arith.constant 0 : index
    %c0_54 = arith.constant 0 : index
    %c0_55 = arith.constant 0 : index
    %75 = tpu.strided_load %arg11[%c0_53, %c0_54, %c0_55] {strides = array<i32: 1, 2, 1>} : memref<2x20x128xf32, #tpu.memory_space<vmem>>, vector<2x8x128xf32>
    %c0_56 = arith.constant 0 : index
    %c1_57 = arith.constant 1 : index
    %c0_58 = arith.constant 0 : index
    %76 = tpu.strided_load %arg11[%c0_56, %c1_57, %c0_58] {strides = array<i32: 1, 2, 1>} : memref<2x20x128xf32, #tpu.memory_space<vmem>>, vector<2x8x128xf32>
    %77 = arith.maximumf %75, %76 : vector<2x8x128xf32>
    %78 = vector.shape_cast %77 : vector<2x8x128xf32> to vector<16x128xf32>
    %79 = arith.truncf %78 : vector<16x128xf32> to vector<16x128xbf16>
    %c0_59 = arith.constant 0 : index
    %c2_60 = arith.constant 2 : index
    %c0_61 = arith.constant 0 : index
    %80 = tpu.strided_load %arg11[%c0_59, %c2_60, %c0_61] {strides = array<i32: 1, 2, 1>} : memref<2x20x128xf32, #tpu.memory_space<vmem>>, vector<2x8x128xf32>
    %c0_62 = arith.constant 0 : index
    %c3 = arith.constant 3 : index
    %c0_63 = arith.constant 0 : index
    %81 = tpu.strided_load %arg11[%c0_62, %c3, %c0_63] {strides = array<i32: 1, 2, 1>} : memref<2x20x128xf32, #tpu.memory_space<vmem>>, vector<2x8x128xf32>
    %82 = arith.maximumf %80, %81 : vector<2x8x128xf32>
    %83 = vector.shape_cast %82 : vector<2x8x128xf32> to vector<16x128xf32>
    %84 = arith.truncf %83 : vector<16x128xf32> to vector<16x128xbf16>
    %c0_64 = arith.constant 0 : index
    %c4 = arith.constant 4 : index
    %c0_65 = arith.constant 0 : index
    %85 = tpu.strided_load %arg11[%c0_64, %c4, %c0_65] {strides = array<i32: 1, 2, 1>} : memref<2x20x128xf32, #tpu.memory_space<vmem>>, vector<2x8x128xf32>
    %c0_66 = arith.constant 0 : index
    %c5 = arith.constant 5 : index
    %c0_67 = arith.constant 0 : index
    %86 = tpu.strided_load %arg11[%c0_66, %c5, %c0_67] {strides = array<i32: 1, 2, 1>} : memref<2x20x128xf32, #tpu.memory_space<vmem>>, vector<2x8x128xf32>
    %87 = arith.maximumf %85, %86 : vector<2x8x128xf32>
    %88 = vector.shape_cast %87 : vector<2x8x128xf32> to vector<16x128xf32>
    %89 = arith.truncf %88 : vector<16x128xf32> to vector<16x128xbf16>
    %90 = tpu.concatenate %79, %84, %89 in 1 : vector<16x128xbf16>, vector<16x128xbf16>, vector<16x128xbf16> -> vector<16x384xbf16>
    %c0_68 = arith.constant 0 : index
    %c0_69 = arith.constant 0 : index
    %91 = vector.load %arg5[%c0_68, %c0_69] : memref<384x128xbf16, #tpu.memory_space<vmem>>, vector<384x128xbf16>
    %cst_70 = arith.constant dense<0.000000e+00> : vector<16x128xf32>
    %92 = tpu.matmul %90, %91, %cst_70 {dimension_numbers = #tpu.dot_dimension_numbers<[1], [0], [0], [1], [0, 0, 1, 1], [], []>} : vector<16x384xbf16>, vector<384x128xbf16>, vector<16x128xf32> -> vector<16x128xf32>
    %c0_71 = arith.constant 0 : index
    %c0_72 = arith.constant 0 : index
    %93 = vector.load %arg6[%c0_71, %c0_72] : memref<1x128xf32, #tpu.memory_space<vmem>>, vector<1x128xf32>
    %94 = vector.broadcast %93 : vector<1x128xf32> to vector<16x128xf32>
    %95 = arith.addf %92, %94 : vector<16x128xf32>
    %c0_73 = arith.constant 0 : index
    %c0_74 = arith.constant 0 : index
    %96 = vector.load %arg7[%c0_73, %c0_74] : memref<1x128xf32, #tpu.memory_space<vmem>>, vector<1x128xf32>
    %c0_75 = arith.constant 0 : index
    %c0_76 = arith.constant 0 : index
    %97 = vector.load %arg8[%c0_75, %c0_76] : memref<1x128xf32, #tpu.memory_space<vmem>>, vector<1x128xf32>
    %cst_77 = arith.constant dense<0.000000e+00> : vector<128xf32>
    %98 = vector.multi_reduction <add>, %95, %cst_77 [0] : vector<16x128xf32> to vector<128xf32>
    %99 = vector.shape_cast %98 : vector<128xf32> to vector<1x128xf32>
    %100 = arith.mulf %95, %95 : vector<16x128xf32>
    %cst_78 = arith.constant dense<0.000000e+00> : vector<128xf32>
    %101 = vector.multi_reduction <add>, %100, %cst_78 [0] : vector<16x128xf32> to vector<128xf32>
    %102 = vector.shape_cast %101 : vector<128xf32> to vector<1x128xf32>
    %103 = tpu.concatenate %99, %102 in 0 : vector<1x128xf32>, vector<1x128xf32> -> vector<2x128xf32>
    %c16_i32_79 = arith.constant 16 : i32
    %104 = tpu.dynamic_rotate %103 by %c16_i32_79 dim 1 : vector<2x128xf32>, i32 -> vector<2x128xf32>
    %105 = arith.addf %103, %104 : vector<2x128xf32>
    %c32_i32_80 = arith.constant 32 : i32
    %106 = tpu.dynamic_rotate %105 by %c32_i32_80 dim 1 : vector<2x128xf32>, i32 -> vector<2x128xf32>
    %107 = arith.addf %105, %106 : vector<2x128xf32>
    %c64_i32_81 = arith.constant 64 : i32
    %108 = tpu.dynamic_rotate %107 by %c64_i32_81 dim 1 : vector<2x128xf32>, i32 -> vector<2x128xf32>
    %109 = arith.addf %107, %108 : vector<2x128xf32>
    %110 = vector.extract_strided_slice %109 {offsets = [0, 0], sizes = [1, 128], strides = [1, 1]} : vector<2x128xf32> to vector<1x128xf32>
    %cst_82 = arith.constant 7.812500e-03 : f32
    %111 = vector.broadcast %cst_82 : f32 to vector<1x128xf32>
    %112 = arith.mulf %110, %111 : vector<1x128xf32>
    %113 = vector.extract_strided_slice %109 {offsets = [1, 0], sizes = [1, 128], strides = [1, 1]} : vector<2x128xf32> to vector<1x128xf32>
    %cst_83 = arith.constant 7.812500e-03 : f32
    %114 = vector.broadcast %cst_83 : f32 to vector<1x128xf32>
    %115 = arith.mulf %113, %114 : vector<1x128xf32>
    %116 = arith.mulf %112, %112 : vector<1x128xf32>
    %117 = arith.subf %115, %116 : vector<1x128xf32>
    %cst_84 = arith.constant 9.99999974E-6 : f32
    %118 = vector.broadcast %cst_84 : f32 to vector<1x128xf32>
    %119 = arith.addf %117, %118 : vector<1x128xf32>
    %120 = math.rsqrt %119 : vector<1x128xf32>
    %121 = arith.mulf %120, %96 : vector<1x128xf32>
    %122 = arith.mulf %112, %121 : vector<1x128xf32>
    %123 = arith.subf %97, %122 : vector<1x128xf32>
    %124 = vector.broadcast %121 : vector<1x128xf32> to vector<16x128xf32>
    %125 = arith.mulf %95, %124 : vector<16x128xf32>
    %126 = vector.broadcast %123 : vector<1x128xf32> to vector<16x128xf32>
    %127 = arith.addf %125, %126 : vector<16x128xf32>
    %cst_85 = arith.constant 0.000000e+00 : f32
    %128 = vector.broadcast %cst_85 : f32 to vector<16x128xf32>
    %129 = arith.maximumf %127, %128 : vector<16x128xf32>
    %c112_i32 = arith.constant 112 : i32
    %130 = tpu.dynamic_rotate %129 by %c112_i32 dim 1 : vector<16x128xf32>, i32 -> vector<16x128xf32>
    %131 = arith.maximumf %129, %130 : vector<16x128xf32>
    %c0_86 = arith.constant 0 : index
    %c0_87 = arith.constant 0 : index
    %132 = vector.load %arg12[%c0_86, %c0_87] : memref<16x128xf32, #tpu.memory_space<vmem>>, vector<16x128xf32>
    tpu.vector_store %arg12[%c0_86, %c0_87], %131 {strides = array<i32>} : memref<16x128xf32, #tpu.memory_space<vmem>>, vector<16x128xf32>,
    %c0_88 = arith.constant 0 : index
    %c0_89 = arith.constant 0 : index
    %133 = tpu.strided_load %arg12[%c0_88, %c0_89] {strides = array<i32: 2, 1>} : memref<16x128xf32, #tpu.memory_space<vmem>>, vector<8x128xf32>
    %c1_90 = arith.constant 1 : index
    %c0_91 = arith.constant 0 : index
    %134 = tpu.strided_load %arg12[%c1_90, %c0_91] {strides = array<i32: 2, 1>} : memref<16x128xf32, #tpu.memory_space<vmem>>, vector<8x128xf32>
    %135 = arith.maximumf %133, %134 : vector<8x128xf32>
    %c0_92 = arith.constant 0 : index
    %c0_93 = arith.constant 0 : index
    %136 = vector.load %arg9[%c0_92, %c0_93] : memref<8x128xf32, #tpu.memory_space<vmem>>, vector<8x128xf32>
    tpu.vector_store %arg9[%c0_92, %c0_93], %135 {strides = array<i32>} : memref<8x128xf32, #tpu.memory_space<vmem>>, vector<8x128xf32>,
    return
  }
}

</mosaic_0001>

<bundles_post_ra>
// kernel: tile.33
= control target key start
LH: loop header
LB: loop body
LE: loop exit
PB: predicated region body
PF: predicated region fallthrough
CT: control target
= control target key end

     0   :  { %s28_s0 = inlined_call_operand.vmem [shape: f32[8], index: 0, kind: input, shape index: {}]   ;;  %s29_s1 = inlined_call_operand.vmem [shape: f32[16,8], index: 1, kind: output, shape index: {}]  }
   0x1   :  { %v4_v0 = vld [vmem:[%s28_s0] ss:$0 sm:$0xff] }
   0x2   :  { %5 = vst [vmem:[%s29_s1] sm:$0xff] %v4_v0  ;;  %8 = vst [vmem:[%s29_s1 + $0x8] sm:$0xff] %v4_v0 }

// kernel: tile.34
= control target key start
LH: loop header
LB: loop body
LE: loop exit
PB: predicated region body
PF: predicated region fallthrough
CT: control target
= control target key end

     0   :  { %s131_s10 = smov 120   ;;  %s132_s11 = smov 104   ;;  %vm3_vm0 = vcmask 64512   ;;  %vm9_vm1 = vcmask 1048512   ;;  %vm15_vm2 = vcmask 982912   ;;  %vm21_vm3 = vcmask 917312   ;;  %s207_s0 = inlined_call_operand.vmem [shape: f32[16,8], index: 0, kind: input, shape index: {}]   ;;  %s208_s1 = inlined_call_operand.vmem [shape: f32[1,128], index: 1, kind: output, shape index: {}]  }
   0x1   :  { %v101_v0 = vld [vmem:[%s207_s0 + $0xf] sm:$0x1]   ;;  %v103_v1 = vld [vmem:[%s207_s0 + $0xd] sm:$0x1]   ;;  %v102_v2 = vld [vmem:[%s207_s0 + $0xe] sm:$0x1]  }
   0x2   :  { %7 = vrot.lane.b32.xlu0 %v101_v0, %s131_s10  ;;  %19 = vrot.lane.b32.xlu1 %v103_v1, %s132_s11  ;;  %v104_v3 = vld [vmem:[%s207_s0 + $0xc] sm:$0x1]   ;;  %s133_s16 = smov 112   ;;  %s134_s17 = smov 96   ;;  %v105_v4 = vld [vmem:[%s207_s0 + $0xb] sm:$0x1]  }
   0x3   :  { %v106_v5 = vld [vmem:[%s207_s0 + $0xa] sm:$0x1]   ;;  %v2_v6 = vld [vmem:[%s207_s0] sm:$0x1]   ;;  %s135_s24 = smov 88   ;;  %s136_s25 = smov 80  }
   0x4   :  { %4 = vst.msk [vmem:[#allocation0] sm:$0x1] %vm3_vm0, %v2_v6   ;;  %v107_v7 = vld [vmem:[%s207_s0 + $0x9] sm:$0x1]   ;;  %v108_v8 = vld [vmem:[%s207_s0 + $0x8] sm:$0x1]  }
   0x5   :  { %s137_s30 = smov 72   ;;  %s138_s2 = smov 64   ;;  %v109_v9 = vld [vmem:[%s207_s0 + $0x7] sm:$0x1]   ;;  %v110_v10 = vld [vmem:[%s207_s0 + $0x6] sm:$0x1]  }
   0x6   :  { %13 = vrot.lane.b32.xlu0 %v102_v2, %s133_s16  ;;  %25 = vrot.lane.b32.xlu1 %v104_v3, %s134_s17  ;;  %s139_s7 = smov 56   ;;  %s140_s8 = smov 48   ;;  %v111_v11 = vld [vmem:[%s207_s0 + $0x5] sm:$0x1]   ;;  %v112_v12 = vld [vmem:[%s207_s0 + $0x4] sm:$0x1]  }
   0x7   :  { %s141_s13 = smov 40   ;;  %s142_s14 = smov 32   ;;  %v113_v13 = vld [vmem:[%s207_s0 + $0x3] sm:$0x1]   ;;  %v114_v14 = vld [vmem:[%s207_s0 + $0x2] sm:$0x1]  }
   0x8   :  { %s143_s19 = smov 24   ;;  %s144_s20 = smov 16   ;;  %v115_v15 = vld [vmem:[%s207_s0 + $0x1] sm:$0x1]   ;;  %vm27_vm4 = vcmask 851712   ;;  %vm33_vm5 = vcmask 786112  }
   0x9   :  { %s145_s0 = smov 8   ;;  %vm39_vm6 = vcmask 720512   ;;  %vm45_vm7 = vcmask 654912   ;;  %vm51_vm8 = vcmask 589312   ;;  %vm57_vm9 = vcmask 523712  }
   0xa   :  { %31 = vrot.lane.b32.xlu0 %v105_v4, %s135_s24  ;;  %37 = vrot.lane.b32.xlu1 %v106_v5, %s136_s25  ;;  %vm63_vm10 = vcmask 458112   ;;  %vm69_vm11 = vcmask 392512   ;;  %vm75_vm12 = vcmask 326912   ;;  %vm81_vm13 = vcmask 261312  }
   0xb   :  { %vm87_vm14 = vcmask 195712   ;;  %vm93_vm15 = vcmask 130112  }
   0xe   :  { %43 = vrot.lane.b32.xlu0 %v107_v7, %s137_s30  ;;  %49 = vrot.lane.b32.xlu1 %v108_v8, %s138_s2 }
  0x12   :  { %55 = vrot.lane.b32.xlu0 %v109_v9, %s139_s7  ;;  %61 = vrot.lane.b32.xlu1 %v110_v10, %s140_s8 }
  0x16   :  { %67 = vrot.lane.b32.xlu0 %v111_v11, %s141_s13  ;;  %73 = vrot.lane.b32.xlu1 %v112_v12, %s142_s14 }
  0x1a   :  { %79 = vrot.lane.b32.xlu0 %v113_v13, %s143_s19  ;;  %85 = vrot.lane.b32.xlu1 %v114_v14, %s144_s20 }
  0x1e   :  { %91 = vrot.lane.b32.xlu0 %v115_v15, %s145_s0 }
  0x74   :  { %v8_v16 = vpop.permute.xlu0 %7   ;;  %v20_v17 = vpop.permute.xlu1 %19  }
  0x75   :  { %10 = vst.msk [vmem:[#allocation0] sm:$0x1] %vm9_vm1, %v8_v16  }
  0x78   :  { %v14_v18 = vpop.permute.xlu0 %13   ;;  %v26_v19 = vpop.permute.xlu1 %25  }
  0x79   :  { %16 = vst.msk [vmem:[#allocation0] sm:$0x1] %vm15_vm2, %v14_v18  }
  0x7a   :  { %22 = vst.msk [vmem:[#allocation0] sm:$0x1] %vm21_vm3, %v20_v17  }
  0x7b   :  { %28 = vst.msk [vmem:[#allocation0] sm:$0x1] %vm27_vm4, %v26_v19  }
  0x7c   :  { %v32_v20 = vpop.permute.xlu0 %31   ;;  %v38_v21 = vpop.permute.xlu1 %37  }
  0x7d   :  { %34 = vst.msk [vmem:[#allocation0] sm:$0x1] %vm33_vm5, %v32_v20  }
  0x7e   :  { %40 = vst.msk [vmem:[#allocation0] sm:$0x1] %vm39_vm6, %v38_v21  }
  0x80   :  { %v44_v22 = vpop.permute.xlu0 %43   ;;  %v50_v23 = vpop.permute.xlu1 %49  }
  0x81   :  { %46 = vst.msk [vmem:[#allocation0] sm:$0x1] %vm45_vm7, %v44_v22  }
  0x82   :  { %52 = vst.msk [vmem:[#allocation0] sm:$0x1] %vm51_vm8, %v50_v23  }
  0x84   :  { %v56_v24 = vpop.permute.xlu0 %55   ;;  %v62_v25 = vpop.permute.xlu1 %61  }
  0x85   :  { %58 = vst.msk [vmem:[#allocation0] sm:$0x1] %vm57_vm9, %v56_v24  }
  0x86   :  { %64 = vst.msk [vmem:[#allocation0] sm:$0x1] %vm63_vm10, %v62_v25  }
  0x88   :  { %v68_v26 = vpop.permute.xlu0 %67   ;;  %v74_v27 = vpop.permute.xlu1 %73  }
  0x89   :  { %70 = vst.msk [vmem:[#allocation0] sm:$0x1] %vm69_vm11, %v68_v26  }
  0x8a   :  { %76 = vst.msk [vmem:[#allocation0] sm:$0x1] %vm75_vm12, %v74_v27  }
  0x8c   :  { %v80_v28 = vpop.permute.xlu0 %79   ;;  %v86_v29 = vpop.permute.xlu1 %85  }
  0x8d   :  { %82 = vst.msk [vmem:[#allocation0] sm:$0x1] %vm81_vm13, %v80_v28  }
  0x8e   :  { %88 = vst.msk [vmem:[#allocation0] sm:$0x1] %vm87_vm14, %v86_v29  }
  0x90   :  { %v92_v30 = vpop.permute.xlu0 %91  }
  0x91   :  { %94 = vst.msk [vmem:[#allocation0] sm:$0x1] %vm93_vm15, %v92_v30  }
  0x98   :  { %v98_v31 = vld [vmem:[#allocation0] sm:$0x1] }
  0x99   :  { %100 = vst [vmem:[%s208_s1] sm:$0x1] %v98_v31 }

// kernel: tile.48
= control target key start
LH: loop header
LB: loop body
LE: loop exit
PB: predicated region body
PF: predicated region fallthrough
CT: control target
= control target key end

     0   :  { %s22_s0 = inlined_call_operand.vmem [shape: f32[16], index: 0, kind: input, shape index: {}]   ;;  %s23_s1 = inlined_call_operand.vmem [shape: f32[8,16], index: 1, kind: output, shape index: {}]  }
   0x1   :  { %v4_v0 = vld [vmem:[%s22_s0] ss:$0 sm:$0xff] }
   0x2   :  { %5 = vst [vmem:[%s23_s1] sm:$0xff] %v4_v0 }

// kernel: tile.49
= control target key start
LH: loop header
LB: loop body
LE: loop exit
PB: predicated region body
PF: predicated region fallthrough
CT: control target
= control target key end

     0   :  { %s67_s10 = smov 112   ;;  %s68_s11 = smov 80   ;;  %vm3_vm0 = vcmask 130048   ;;  %vm9_vm1 = vcmask 1048448   ;;  %vm15_vm2 = vcmask 917248   ;;  %vm21_vm3 = vcmask 786048   ;;  %s111_s0 = inlined_call_operand.vmem [shape: f32[8,16], index: 0, kind: input, shape index: {}]   ;;  %s112_s1 = inlined_call_operand.vmem [shape: f32[1,128], index: 1, kind: output, shape index: {}]  }
   0x1   :  { %v53_v0 = vld [vmem:[%s111_s0 + $0x7] sm:$0x1]   ;;  %v55_v1 = vld [vmem:[%s111_s0 + $0x5] sm:$0x1]   ;;  %v54_v2 = vld [vmem:[%s111_s0 + $0x6] sm:$0x1]  }
   0x2   :  { %7 = vrot.lane.b32.xlu0 %v53_v0, %s67_s10  ;;  %19 = vrot.lane.b32.xlu1 %v55_v1, %s68_s11  ;;  %v56_v3 = vld [vmem:[%s111_s0 + $0x4] sm:$0x1]   ;;  %v2_v4 = vld [vmem:[%s111_s0] sm:$0x1]   ;;  %s69_s18 = smov 96   ;;  %s70_s19 = smov 64  }
   0x3   :  { %4 = vst.msk [vmem:[#allocation0] sm:$0x1] %vm3_vm0, %v2_v4   ;;  %v57_v5 = vld [vmem:[%s111_s0 + $0x3] sm:$0x1]   ;;  %v58_v6 = vld [vmem:[%s111_s0 + $0x2] sm:$0x1]  }
   0x4   :  { %s71_s24 = smov 48   ;;  %s72_s25 = smov 32   ;;  %v59_v7 = vld [vmem:[%s111_s0 + $0x1] sm:$0x1]   ;;  %vm27_vm4 = vcmask 654848   ;;  %vm33_vm5 = vcmask 523648  }
   0x5   :  { %s73_s0 = smov 16   ;;  %vm39_vm6 = vcmask 392448   ;;  %vm45_vm7 = vcmask 261248  }
   0x6   :  { %13 = vrot.lane.b32.xlu0 %v54_v2, %s69_s18  ;;  %25 = vrot.lane.b32.xlu1 %v56_v3, %s70_s19 }
   0xa   :  { %31 = vrot.lane.b32.xlu0 %v57_v5, %s71_s24  ;;  %37 = vrot.lane.b32.xlu1 %v58_v6, %s72_s25 }
   0xe   :  { %43 = vrot.lane.b32.xlu0 %v59_v7, %s73_s0 }
  0x74   :  { %v8_v8 = vpop.permute.xlu0 %7   ;;  %v20_v9 = vpop.permute.xlu1 %19  }
  0x75   :  { %10 = vst.msk [vmem:[#allocation0] sm:$0x1] %vm9_vm1, %v8_v8  }
  0x78   :  { %v14_v10 = vpop.permute.xlu0 %13   ;;  %v26_v11 = vpop.permute.xlu1 %25  }
  0x79   :  { %16 = vst.msk [vmem:[#allocation0] sm:$0x1] %vm15_vm2, %v14_v10  }
  0x7a   :  { %22 = vst.msk [vmem:[#allocation0] sm:$0x1] %vm21_vm3, %v20_v9  }
  0x7b   :  { %28 = vst.msk [vmem:[#allocation0] sm:$0x1] %vm27_vm4, %v26_v11  }
  0x7c   :  { %v32_v12 = vpop.permute.xlu0 %31   ;;  %v38_v13 = vpop.permute.xlu1 %37  }
  0x7d   :  { %34 = vst.msk [vmem:[#allocation0] sm:$0x1] %vm33_vm5, %v32_v12  }
  0x7e   :  { %40 = vst.msk [vmem:[#allocation0] sm:$0x1] %vm39_vm6, %v38_v13  }
  0x80   :  { %v44_v14 = vpop.permute.xlu0 %43  }
  0x81   :  { %46 = vst.msk [vmem:[#allocation0] sm:$0x1] %vm45_vm7, %v44_v14  }
  0x88   :  { %v50_v15 = vld [vmem:[#allocation0] sm:$0x1] }
  0x89   :  { %52 = vst [vmem:[%s112_s1] sm:$0x1] %v50_v15 }

// kernel: encoder_forward.1
= control target key start
LH: loop header
LB: loop body
LE: loop exit
PB: predicated region body
PF: predicated region fallthrough
CT: control target
= control target key end

     0   :  { %vm33_vm0 = vcmask 122880   ;;  %vm42_vm1 = vcmask 130048   ;;  %v931_v1 = vmov 0.0   ;;  %vm295_vm2 = vcmask 1040384   ;;  %s933_s23 = smov 16   ;;  %s934_s24 = smov 32   ;;  %s1174_s1 = inlined_call_operand.vmem [shape: bf16[3,16,128], index: 1, kind: input, shape index: {}]   ;;  %s1175_s0 = inlined_call_operand.vmem [shape: f32[2,16,16], index: 0, kind: input, shape index: {}]   ;;  %s1176_s2 = inlined_call_operand.vmem [shape: f32[1,128], index: 2, kind: input, shape index: {}]   ;;  %s1177_s5 = inlined_call_operand.vmem [shape: bf16[384,128], index: 5, kind: input, shape index: {}]   ;;  %s1178_s3 = inlined_call_operand.vmem [shape: f32[1,128], index: 3, kind: input, shape index: {}]   ;;  %s1179_s4 = inlined_call_operand.vmem [shape: f32[1,128], index: 4, kind: input, shape index: {}]   ;;  %s1180_s6 = inlined_call_operand.vmem [shape: f32[1,128], index: 6, kind: input, shape index: {}]   ;;  %s1181_s7 = inlined_call_operand.vmem [shape: f32[1,128], index: 7, kind: input, shape index: {}]   ;;  %s1182_s8 = inlined_call_operand.vmem [shape: f32[1,128], index: 8, kind: input, shape index: {}]   ;;  %s1183_s9 = inlined_call_operand.vmem [shape: f32[8,128], index: 9, kind: output, shape index: {}]  }
   0x1   :  { %v900_v0 = vld [vmem:[%s1174_s1] sm:$0xff]   ;;  %34 = vst.msk [vmem:[#allocation2] sm:$0x1] %vm33_vm0, %v931_v1  ;;  %37 = vst.msk [vmem:[#allocation2 + $0x29] sm:$0x1] %vm33_vm0, %v931_v1  ;;  %v39_v3 = vld [vmem:[%s1175_s0 + $0x8] sm:$0xff] }
   0x2   :  { %35 = vst.msk [vmem:[#allocation2 + $0x18] sm:$0x1] %vm33_vm0, %v931_v1  ;;  %36 = vst.msk [vmem:[#allocation2 + $0x11] sm:$0x1] %vm33_vm0, %v931_v1  ;;  %v38_v2 = vld [vmem:[%s1175_s0] sm:$0xff]  ;;  %852 = vmatprep.subr.bf16.mxu0 %v900_v0  ;;  %v901_v4 = vld [vmem:[%s1174_s1 + $0x10] sm:$0xff]  }
   0x3   :  { %363 = vst [vmem:[#allocation3] sm:$0x3] %v931_v1  ;;  %364 = vst [vmem:[#allocation3 + $0x18] sm:$0x3] %v931_v1  ;;  %v40_v5 = vld [vmem:[%s1175_s0 + $0x10] sm:$0xff]  ;;  %853 = vmatpush3.bf16.msra.mxu0 %v900_v0  ;;  %v41_v6 = vld [vmem:[%s1175_s0 + $0x18] sm:$0xff] }
   0x4   :  { %365 = vst [vmem:[#allocation3 + $0x12] sm:$0x3] %v931_v1  ;;  %366 = vst [vmem:[#allocation3 + $0x2a] sm:$0x3] %v931_v1  ;;  %858 = vmatprep.subr.bf16.mxu0 %v901_v4  ;;  %v902_v7 = vld [vmem:[%s1174_s1 + $0x8] sm:$0xff]   ;;  %s935_s25 = smov 64  }
   0x5   :  { %43 = vst.msk [vmem:[#allocation2 + $0x1] sm:$0xff] %vm42_vm1, %v38_v2  ;;  %44 = vst.msk [vmem:[#allocation2 + $0x9] sm:$0xff] %vm42_vm1, %v39_v3  ;;  %846 = vmatprep.subr.bf16.mxu1 %v902_v7  ;;  %v778_v32 = vld [vmem:[%s1176_s2] ss:$0 sm:$0xff]  ;;  %s932_s2 = smov 8   ;;  %vm936_vm3 = vmmov 0  }
   0x6   :  { %45 = vst.msk [vmem:[#allocation2 + $0x19] sm:$0xff] %vm42_vm1, %v40_v5  ;;  %46 = vst.msk [vmem:[#allocation2 + $0x21] sm:$0xff] %vm42_vm1, %v41_v6  ;;  %847 = vmatpush3.bf16.msra.mxu1 %v902_v7  ;;  %s937_s11 = smov 120  }
   0xc   :  { %v47_v8 = vld [vmem:[#allocation2] sm:$0xff]  ;;  %v48_v9 = vld [vmem:[#allocation2 + $0x8] sm:$0xff] }
   0xd   :  { %v55_v10 = vld [vmem:[#allocation2 + $0x1] sm:$0xff]  ;;  %v51_v11 = vpack.c.bf16 %v48_v9, %v47_v8  ;;  %v49_v12 = vld [vmem:[#allocation2 + $0x18] sm:$0xff]  ;;  %v56_v13 = vld [vmem:[#allocation2 + $0x9] sm:$0xff] }
   0xe   :  { %v57_v14 = vld [vmem:[#allocation2 + $0x19] sm:$0xff]  ;;  %v59_v16 = vpack.c.bf16 %v56_v13, %v55_v10  ;;  %v58_v17 = vld [vmem:[#allocation2 + $0x21] sm:$0xff]  ;;  %v187_v21 = vld [vmem:[#allocation2 + $0xa] sm:$0xff] }
   0xf   :  { %v50_v15 = vld [vmem:[#allocation2 + $0x20] sm:$0xff]  ;;  %854 = vmatprep.mubr.msk.bf16.mxu0 %vm42_vm1, %v51_v11  ;;  %v60_v20 = vpack.c.bf16 %v58_v17, %v57_v14  ;;  %v907_v13 = vld [vmem:[%s1177_s5 + $0x88] sm:$0xff]   ;;  %v911_v17 = vld [vmem:[%s1177_s5 + $0x10] sm:$0xff]  }
  0x10   :  { %v186_v18 = vld [vmem:[#allocation2 + $0x2] sm:$0xff]  ;;  %v52_v19 = vpack.c.bf16 %v50_v15, %v49_v12  ;;  %848 = vmatprep.mubr.msk.bf16.mxu1 %vm42_vm1, %v59_v16  ;;  %v188_v23 = vld [vmem:[#allocation2 + $0x1a] sm:$0xff]  ;;  %v909_v15 = vld [vmem:[%s1177_s5 + $0x50] sm:$0xff]  }
  0x11   :  { %v190_v22 = vpack.c.bf16 %v187_v21, %v186_v18  ;;  %849 = vmatmul.mubr.msk.bf16.vlgmr.msra.gmra.mrb[0].mxu1 %vm42_vm1, %v60_v20  ;;  %v189_v24 = vld [vmem:[#allocation2 + $0x22] sm:$0xff]  ;;  %v910_v16 = vld [vmem:[%s1177_s5 + $0x90] sm:$0xff]   ;;  %v912_v18 = vld [vmem:[%s1177_s5 + $0x58] sm:$0xff]  }
  0x12   :  { %855 = vmatmul.mubr.msk.bf16.vlgmr.msra.gmra.mrb[0].mxu0 %vm42_vm1, %v52_v19  ;;  %v191_v25 = vpack.c.bf16 %v189_v24, %v188_v23  ;;  %v903_v9 = vld [vmem:[%s1177_s5 + $0x40] sm:$0xff]   ;;  %v906_v12 = vld [vmem:[%s1177_s5 + $0x48] sm:$0xff]   ;;  %v913_v19 = vld [vmem:[%s1177_s5 + $0x98] sm:$0xff]  }
  0x13   :  { %859 = vmatpush3.bf16.msra.mxu0 %v901_v4  ;;  %860 = vmatprep.mubr.msk.bf16.mxu0 %vm42_vm1, %v190_v22  ;;  %v904_v10 = vld [vmem:[%s1177_s5 + $0x80] sm:$0xff]   ;;  %v908_v14 = vld [vmem:[%s1177_s5 + $0x8] sm:$0xff]  }
  0x14   :  { %864 = vmatprep.subr.bf16.mxu0 %v931_v1  ;;  %815 = vmatprep.subr.bf16.mxu1 %v903_v9  ;;  %v905_v11 = vld [vmem:[%s1177_s5] sm:$0xff]  }
  0x15   :  { %816 = vmatpush3.bf16.msra.mxu1 %v905_v11 }
  0x16   :  { %817 = vmatprep.subr.bf16.mxu1 %v906_v12 }
  0x19   :  { %818 = vmatpush3.bf16.msra.mxu1 %v908_v14 }
  0x1a   :  { %819 = vmatprep.subr.bf16.mxu1 %v909_v15 }
  0x1d   :  { %820 = vmatpush3.bf16.msra.mxu1 %v911_v17 }
  0x1e   :  { %861 = vmatmul.mubr.msk.bf16.vlgmr.msra.gmra.mrb[0].mxu0 %vm42_vm1, %v191_v25  ;;  %821 = vmatprep.subr.bf16.mxu1 %v912_v18 }
  0x1f   :  { %865 = vmatpush3.bf16.msra.mxu0 %v904_v10  ;;  %880 = vmatprep.mubr.msk.bf16.mxu0 %vm936_vm3, %v931_v1 }
  0x20   :  { %866 = vmatprep.subr.bf16.mxu0 %v931_v1 }
  0x23   :  { %867 = vmatpush3.bf16.msra.mxu0 %v907_v13 }
  0x24   :  { %868 = vmatprep.subr.bf16.mxu0 %v931_v1 }
  0x27   :  { %869 = vmatpush3.bf16.msra.mxu0 %v910_v16 }
  0x28   :  { %870 = vmatprep.subr.bf16.mxu0 %v931_v1 }
  0x2b   :  { %871 = vmatpush3.bf16.msra.mxu0 %v913_v19 }
  0x2c   :  { %872 = vmatprep.subr.bf16.mxu0 %v931_v1 }
  0xe4   :  { %v850_v26 = vpop.f32.mrb[0].mxu1 }
  0xe5   :  { %v110_v27 = vpop.f32.mrb[1].mxu1 }
  0xe6   :  { %v851_v28 = vpop.f32.mrb[2].mxu1 }
  0xe7   :  { %v113_v29 = vpop.f32.mrb[3].mxu1 }
  0xf1   :  { %v862_v30 = vpop.f32.mrb[0].mxu0 }
  0xf2   :  { %v884_v31 = vadd.f32 %v862_v30, %v850_v26  ;;  %v241_v33 = vpop.f32.mrb[1].mxu0 }
  0xf3   :  { %v885_v34 = vadd.f32 %v241_v33, %v110_v27  ;;  %v863_v35 = vpop.f32.mrb[2].mxu0  ;;  %v329_v27 = vlaneseq  ;;  %v914_v33 = vld [vmem:[%s1177_s5 + $0x18] sm:$0xff]  }
  0xf4   :  { %v886_v36 = vadd.f32 %v863_v35, %v851_v28  ;;  %v244_v37 = vpop.f32.mrb[3].mxu0  ;;  %v1034_v40 = vadd.f32 %v884_v31, %v778_v32  ;;  %822 = vmatpush3.bf16.msra.mxu1 %v914_v33  ;;  %v272_v35 = vld [vmem:[%s1179_s4] sm:$0x1] }
  0xf5   :  { %v1032_v38 = vadd.f32 %v885_v34, %v778_v32  ;;  %v887_v39 = vadd.f32 %v244_v37, %v113_v29  ;;  %v1093_v28 = vshrl.u32 %v329_v27, 7  ;;  %v779_v29 = vld [vmem:[%s1178_s3] ss:$0 sm:$0xff] }
  0xf6   :  { %v1040_v43 = vadd.f32 %v886_v36, %v778_v32  ;;  %v284_v46 = vmul.f32 %v1034_v40, %v1034_v40  ;;  %v915_v36 = vld [vmem:[%s1177_s5 + $0x60] sm:$0xff]  }
  0xf7   :  { %v1036_v41 = vadd.f32 %v887_v39, %v778_v32  ;;  %v282_v42 = vmul.f32 %v1032_v38, %v1032_v38  ;;  %v331_v31 = vsub.s32 1, %v1093_v28  ;;  %v916_v37 = vld [vmem:[%s1177_s5 + $0xa0] sm:$0xff]   ;;  %v340_v39 = vsub.s32 0, %v1093_v28  ;;  %823 = vmatprep.subr.bf16.mxu1 %v915_v36 }
  0xf8   :  { %v285_v49 = vmul.f32 %v1040_v43, %v1040_v43  ;;  %873 = vmatpush3.bf16.msra.mxu0 %v916_v37 }
  0xf9   :  { %v273_v44 = vadd.f32 %v1036_v41, %v1032_v38  ;;  %v283_v45 = vmul.f32 %v1036_v41, %v1036_v41  ;;  %874 = vmatprep.subr.bf16.mxu0 %v931_v1 }
  0xfb   :  { %v274_v47 = vadd.f32 %v273_v44, %v1034_v40  ;;  %v286_v48 = vadd.f32 %v283_v45, %v282_v42  ;;  %v917_v45 = vld [vmem:[%s1177_s5 + $0x20] sm:$0xff]  }
  0xfc   :  { %824 = vmatpush3.bf16.msra.mxu1 %v917_v45 }
  0xfd   :  { %v287_v50 = vadd.f32 %v286_v48, %v284_v46  ;;  %v275_v51 = vadd.f32 %v274_v47, %v1040_v43  ;;  %v918_v47 = vld [vmem:[%s1177_s5 + $0x68] sm:$0xff]  }
  0xfe   :  { %v919_v48 = vld [vmem:[%s1177_s5 + $0xa8] sm:$0xff]   ;;  %825 = vmatprep.subr.bf16.mxu1 %v918_v47 }
  0xff   :  { %v276_v52 = vrot.slane %v275_v51, 4  ;;  %v288_v53 = vadd.f32 %v287_v50, %v285_v49  ;;  %v920_v49 = vld [vmem:[%s1177_s5 + $0x28] sm:$0xff]   ;;  %875 = vmatpush3.bf16.msra.mxu0 %v919_v48 }
 0x100   :  { %826 = vmatpush3.bf16.msra.mxu1 %v920_v49  ;;  %876 = vmatprep.subr.bf16.mxu0 %v931_v1 }
 0x101   :  { %v277_v54 = vadd.f32 %v276_v52, %v275_v51  ;;  %v289_v55 = vrot.slane %v288_v53, 4 }
 0x103   :  { %v278_v56 = vrot.slane %v277_v54, 2  ;;  %v290_v57 = vadd.f32 %v289_v55, %v288_v53  ;;  %v921_v53 = vld [vmem:[%s1177_s5 + $0x70] sm:$0xff]  }
 0x104   :  { %827 = vmatprep.subr.bf16.mxu1 %v921_v53 }
 0x105   :  { %v279_v58 = vadd.f32 %v278_v56, %v277_v54  ;;  %v291_v59 = vrot.slane %v290_v57, 2  ;;  %v922_v54 = vld [vmem:[%s1177_s5 + $0xb0] sm:$0xff]  }
 0x106   :  { %877 = vmatpush3.bf16.msra.mxu0 %v922_v54 }
 0x107   :  { %v280_v60 = vrot.slane %v279_v58, 1  ;;  %v292_v61 = vadd.f32 %v291_v59, %v290_v57  ;;  %878 = vmatprep.subr.bf16.mxu0 %v931_v1 }
 0x109   :  { %v293_v62 = vrot.slane %v292_v61, 1  ;;  %v281_v63 = vadd.f32 %v280_v60, %v279_v58 }
 0x10b   :  { %v294_v0 = vadd.f32 %v293_v62, %v292_v61  ;;  %v924_v62 = vld [vmem:[%s1177_s5 + $0x78] sm:$0xff]  }
 0x10d   :  { %v296_v2 = vsel %vm295_vm2, %v281_v63, %v294_v0 }
 0x10e   :  { %297 = vrot.lane.b32.xlu0 %v296_v2, %s932_s2 }
 0x180   :  { %v298_v3 = vpop.permute.xlu0 %297 }
 0x181   :  { %v299_v4 = vadd.f32 %v298_v3, %v296_v2 }
 0x183   :  { %300 = vrot.lane.b32.xlu0 %v299_v4, %s933_s23 }
 0x1f5   :  { %v301_v5 = vpop.permute.xlu0 %300 }
 0x1f6   :  { %v302_v6 = vadd.f32 %v301_v5, %v299_v4 }
 0x1f8   :  { %303 = vrot.lane.b32.xlu1 %v302_v6, %s934_s24 }
 0x26a   :  { %v304_v7 = vpop.permute.xlu1 %303 }
 0x26b   :  { %v305_v8 = vadd.f32 %v304_v7, %v302_v6 }
 0x26d   :  { %306 = vrot.lane.b32.xlu1 %v305_v8, %s935_s25 }
 0x2df   :  { %v307_v20 = vpop.permute.xlu1 %306 }
 0x2e0   :  { %v308_v21 = vadd.f32 %v307_v20, %v305_v8 }
 0x2e2   :  { %v309_v22 = vmul.f32 0.001953125, %v308_v21 }
 0x2e4   :  { %v310_v23 = vmul.f32 %v309_v22, %v309_v22 }
 0x2e6   :  { %v312_v24 = vrot.slane %v310_v23, 7 }
 0x2e8   :  { %v314_v25 = vsub.f32 %v309_v22, %v312_v24 }
 0x2ea   :  { %v315_v26 = vadd.f32 1e-05, %v314_v25 }
 0x2ec   :  { %927 = vrsqrt.f32 %v315_v26 }
 0x2f6   :  { %v928_v30 = vpop.eup %927 }
 0x2f7   :  { %v323_v32 = vmul.f32 %v928_v30, %v779_v29 }
 0x2f9   :  { %v325_v34 = vrot.slane %v323_v32, 1  ;;  %v332_v44 = vrot.slane %v323_v32, %v331_v31 }
 0x2fb   :  { %v327_v42 = vmul.f32 %v325_v34, %v309_v22  ;;  %v334_v51 = vmul.f32 %v332_v44, %v1036_v41  ;;  %v333_v52 = vmul.f32 %v332_v44, %v1032_v38  ;;  %v336_v57 = vmul.f32 %v332_v44, %v1040_v43  ;;  %v923_v38 = vld [vmem:[%s1177_s5 + $0x30] sm:$0xff]   ;;  %v926_v43 = vld [vmem:[%s1177_s5 + $0x38] sm:$0xff]  }
 0x2fc   :  { %v335_v41 = vmul.f32 %v332_v44, %v1034_v40  ;;  %v925_v40 = vld [vmem:[%s1177_s5 + $0xb8] sm:$0xff]   ;;  %828 = vmatpush3.bf16.msra.mxu1 %v923_v38 }
 0x2fd   :  { %v328_v46 = vsub.f32 %v272_v35, %v327_v42  ;;  %829 = vmatprep.subr.bf16.mxu1 %v924_v62  ;;  %879 = vmatpush3.bf16.msra.mxu0 %v925_v40  ;;  %v780_v35 = vld [vmem:[%s1180_s6] ss:$0 sm:$0xff] }
 0x2ff   :  { %v341_v50 = vrot.slane %v328_v46, %v340_v39 }
 0x300   :  { %830 = vmatpush3.bf16.msra.mxu1 %v926_v43 }
 0x301   :  { %v344_v55 = vadd.f32 %v341_v50, %v334_v51  ;;  %v343_v56 = vadd.f32 %v341_v50, %v333_v52  ;;  %v346_v60 = vadd.f32 %v341_v50, %v336_v57  ;;  %v345_v61 = vadd.f32 %v341_v50, %v335_v41 }
 0x303   :  { %v348_v58 = vmax.f32 %v344_v55, 0.0  ;;  %v347_v59 = vmax.f32 %v343_v56, 0.0  ;;  %v350_v63 = vmax.f32 %v346_v60, 0.0  ;;  %v349_v0 = vmax.f32 %v345_v61, 0.0 }
 0x305   :  { %353 = vrot.lane.b32.xlu1 %v348_v58, %s937_s11  ;;  %351 = vrot.lane.b32.xlu0 %v347_v59, %s937_s11 }
 0x309   :  { %357 = vrot.lane.b32.xlu1 %v350_v63, %s937_s11  ;;  %355 = vrot.lane.b32.xlu0 %v349_v0, %s937_s11 }
 0x377   :  { %v354_v2 = vpop.permute.xlu1 %353  ;;  %v352_v3 = vpop.permute.xlu0 %351 }
 0x378   :  { %v360_v4 = vmax.f32 %v348_v58, %v354_v2  ;;  %v359_v5 = vmax.f32 %v347_v59, %v352_v3 }
 0x37a   :  { %368 = vst [vmem:[#allocation3 + $0xa] sm:$0xff] %v360_v4  ;;  %367 = vst [vmem:[#allocation3 + $0x2] sm:$0xff] %v359_v5 }
 0x37b   :  { %v358_v6 = vpop.permute.xlu1 %357  ;;  %v356_v7 = vpop.permute.xlu0 %355 }
 0x37c   :  { %v362_v1 = vmax.f32 %v350_v63, %v358_v6  ;;  %v361_v8 = vmax.f32 %v349_v0, %v356_v7 }
 0x37e   :  { %370 = vst [vmem:[#allocation3 + $0x22] sm:$0xff] %v362_v1  ;;  %369 = vst [vmem:[#allocation3 + $0x1a] sm:$0xff] %v361_v8 }
 0x381   :  { %v382_v9 = vld [vmem:[#allocation3 + $0x2] ss:$2 sm:$0xff]  ;;  %v386_v10 = vld [vmem:[#allocation3 + $0x3] ss:$2 sm:$0xff] }
 0x382   :  { %v393_v11 = vld [vmem:[#allocation3 + $0x4] ss:$2 sm:$0xff]  ;;  %v397_v12 = vld [vmem:[#allocation3 + $0x5] ss:$2 sm:$0xff]  ;;  %v389_v18 = vmax.f32 %v382_v9, %v386_v10 }
 0x383   :  { %v371_v13 = vld [vmem:[#allocation3] ss:$2 sm:$0xff]  ;;  %v375_v14 = vld [vmem:[#allocation3 + $0x1] ss:$2 sm:$0xff]  ;;  %v400_v23 = vmax.f32 %v393_v11, %v397_v12  ;;  %v805_v12 = vld [vmem:[%s1181_s7] ss:$0 sm:$0xff] }
 0x384   :  { %v378_v25 = vmax.f32 %v371_v13, %v375_v14  ;;  %s938_s7 = smov 112  }
 0x385   :  { %v384_v15 = vld [vmem:[#allocation3 + $0x1a] ss:$2 sm:$0xff]  ;;  %v388_v16 = vld [vmem:[#allocation3 + $0x1b] ss:$2 sm:$0xff] }
 0x386   :  { %v395_v17 = vld [vmem:[#allocation3 + $0x1c] ss:$2 sm:$0xff]  ;;  %v390_v19 = vmax.f32 %v384_v15, %v388_v16  ;;  %v399_v20 = vld [vmem:[#allocation3 + $0x1d] ss:$2 sm:$0xff]  ;;  %v685_v16 = vld [vmem:[%s1182_s8] sm:$0x1] }
 0x387   :  { %v373_v21 = vld [vmem:[#allocation3 + $0x18] ss:$2 sm:$0xff]  ;;  %v377_v22 = vld [vmem:[#allocation3 + $0x19] ss:$2 sm:$0xff]  ;;  %v401_v24 = vmax.f32 %v395_v17, %v399_v20 }
 0x388   :  { %v379_v26 = vmax.f32 %v373_v21, %v377_v22  ;;  %v391_v27 = vpack.c.bf16 %v390_v19, %v389_v18 }
 0x389   :  { %v402_v29 = vpack.c.bf16 %v401_v24, %v400_v23 }
 0x38a   :  { %v380_v30 = vpack.c.bf16 %v379_v26, %v378_v25  ;;  %634 = vmatprep.mubr.bf16.mxu1 %v391_v27 }
 0x38b   :  { %881 = vmatmul.mubr.bf16.vlgmr.msra.gmra.mrb[4].mxu0 %v402_v29 }
 0x38c   :  { %635 = vmatmul.mubr.bf16.vlgmr.msra.gmra.mrb[4].mxu1 %v380_v30 }
 0x45e   :  { %v677_v32 = vpop.f32.mrb[4].mxu0 }
 0x45f   :  { %v831_v33 = vpop.f32.mrb[4].mxu1  ;;  %v882_v34 = vpop.f32.mrb[5].mxu0 }
 0x460   :  { %v832_v36 = vpop.f32.mrb[5].mxu1  ;;  %v680_v42 = vpop.f32.mrb[6].mxu0 }
 0x461   :  { %v833_v37 = vadd.f32 %v832_v36, %v831_v33  ;;  %v834_v44 = vpop.f32.mrb[6].mxu1  ;;  %v883_v45 = vpop.f32.mrb[7].mxu0 }
 0x462   :  { %v835_v46 = vpop.f32.mrb[7].mxu1 }
 0x463   :  { %v637_v47 = vadd.f32 %v833_v37, %v780_v35  ;;  %v836_v48 = vadd.f32 %v835_v46, %v834_v44 }
 0x465   :  { %v678_v49 = vadd.f32 %v677_v32, %v637_v47  ;;  %v640_v50 = vadd.f32 %v836_v48, %v780_v35 }
 0x467   :  { %v681_v51 = vadd.f32 %v680_v42, %v640_v50  ;;  %v693_v52 = vmul.f32 %v678_v49, %v678_v49 }
 0x469   :  { %v686_v53 = vadd.f32 %v681_v51, %v678_v49  ;;  %v694_v54 = vmul.f32 %v681_v51, %v681_v51 }
 0x46b   :  { %v687_v55 = vrot.slane %v686_v53, 4  ;;  %v695_v56 = vadd.f32 %v694_v54, %v693_v52 }
 0x46d   :  { %v688_v57 = vadd.f32 %v687_v55, %v686_v53  ;;  %v696_v41 = vrot.slane %v695_v56, 4 }
 0x46f   :  { %v689_v38 = vrot.slane %v688_v57, 2  ;;  %v697_v58 = vadd.f32 %v696_v41, %v695_v56 }
 0x471   :  { %v690_v59 = vadd.f32 %v689_v38, %v688_v57  ;;  %v698_v60 = vrot.slane %v697_v58, 2 }
 0x473   :  { %v691_v61 = vrot.slane %v690_v59, 1  ;;  %v699_v62 = vadd.f32 %v698_v60, %v697_v58 }
 0x475   :  { %v700_v40 = vrot.slane %v699_v62, 1  ;;  %v692_v43 = vadd.f32 %v691_v61, %v690_v59 }
 0x477   :  { %v701_v63 = vadd.f32 %v700_v40, %v699_v62 }
 0x479   :  { %v702_v0 = vsel %vm295_vm2, %v692_v43, %v701_v63 }
 0x47a   :  { %703 = vrot.lane.b32.xlu0 %v702_v0, %s933_s23 }
 0x4ec   :  { %v704_v2 = vpop.permute.xlu0 %703 }
 0x4ed   :  { %v705_v3 = vadd.f32 %v704_v2, %v702_v0 }
 0x4ef   :  { %706 = vrot.lane.b32.xlu1 %v705_v3, %s934_s24 }
 0x561   :  { %v707_v4 = vpop.permute.xlu1 %706 }
 0x562   :  { %v708_v5 = vadd.f32 %v707_v4, %v705_v3 }
 0x564   :  { %709 = vrot.lane.b32.xlu0 %v708_v5, %s935_s25 }
 0x5d6   :  { %v710_v6 = vpop.permute.xlu0 %709 }
 0x5d7   :  { %v711_v7 = vadd.f32 %v710_v6, %v708_v5 }
 0x5d9   :  { %v712_v1 = vmul.f32 0.0078125, %v711_v7 }
 0x5db   :  { %v713_v8 = vmul.f32 %v712_v1, %v712_v1 }
 0x5dd   :  { %v715_v9 = vrot.slane %v713_v8, 7 }
 0x5df   :  { %v717_v10 = vsub.f32 %v712_v1, %v715_v9 }
 0x5e1   :  { %v718_v11 = vadd.f32 1e-05, %v717_v10 }
 0x5e3   :  { %929 = vrsqrt.f32 %v718_v11 }
 0x5ed   :  { %v930_v13 = vpop.eup %929 }
 0x5ee   :  { %v726_v14 = vmul.f32 %v930_v13, %v805_v12 }
 0x5f0   :  { %v728_v15 = vrot.slane %v726_v14, 1  ;;  %v735_v18 = vrot.slane %v726_v14, %v331_v31 }
 0x5f2   :  { %v730_v17 = vmul.f32 %v728_v15, %v712_v1  ;;  %v737_v20 = vmul.f32 %v735_v18, %v681_v51  ;;  %v736_v22 = vmul.f32 %v735_v18, %v678_v49 }
 0x5f4   :  { %v731_v19 = vsub.f32 %v685_v16, %v730_v17 }
 0x5f6   :  { %v742_v21 = vrot.slane %v731_v19, %v340_v39 }
 0x5f8   :  { %v745_v23 = vadd.f32 %v742_v21, %v737_v20  ;;  %v744_v24 = vadd.f32 %v742_v21, %v736_v22 }
 0x5fa   :  { %v747_v25 = vmax.f32 %v745_v23, 0.0  ;;  %v746_v26 = vmax.f32 %v744_v24, 0.0 }
 0x5fc   :  { %750 = vrot.lane.b32.xlu0 %v747_v25, %s938_s7  ;;  %748 = vrot.lane.b32.xlu1 %v746_v26, %s938_s7 }
 0x66e   :  { %v751_v27 = vpop.permute.xlu0 %750  ;;  %v749_v29 = vpop.permute.xlu1 %748 }
 0x66f   :  { %v753_v30 = vmax.f32 %v747_v25, %v751_v27  ;;  %v752_v32 = vmax.f32 %v746_v26, %v749_v29 }
 0x671   :  { %755 = vst [vmem:[#allocation4 + $0x8] sm:$0xff] %v753_v30  ;;  %754 = vst [vmem:[#allocation4] sm:$0xff] %v752_v32 }
 0x678   :  { %v756_v31 = vld [vmem:[#allocation4] ss:$2 sm:$0xff]  ;;  %v758_v33 = vld [vmem:[#allocation4 + $0x1] ss:$2 sm:$0xff] }
 0x679   :  { %v759_v34 = vmax.f32 %v756_v31, %v758_v33 }
 0x67b   :  { %760 = vst [vmem:[%s1183_s9] sm:$0xff] %v759_v34 }

</bundles_post_ra>
